<compile_context>
chip_gen: v7x
topology: tpu7x:2x2x1
jax: 0.10.0
libtpu: 0.0.40
codegen_flags: <defaults>
</compile_context>

<pallas_src>
import functools
import math

import jax
import jax.numpy as jnp
from jax.experimental import pallas as pl
from jax.experimental.pallas import tpu as pltpu


# ------------------------- generation-aware tuning ---------------------------

@functools.lru_cache(maxsize=None)
def _vmem_limit():
    """Scoped-VMEM limit: ~75% of physical, capped (96 MiB v5e/v6e, 48 MiB v7x)."""
    try:
        cap = int(pltpu.get_tpu_info().vmem_capacity_bytes)
    except Exception:
        cap = 64 * 1024 * 1024  # conservative fallback (v7x-sized)
    return min((cap * 3) // 4, 96 * 1024 * 1024)


def _row_tile_target():
    # Bigger row tiles on 128-MiB-VMEM generations (v5e/v6e); conservative on v7x.
    return 512 if _vmem_limit() > 48 * 1024 * 1024 else 256


def _row_tile(n_rows, target):
    """Largest tile <= target that divides n_rows and keeps (8,128) tiling legal."""
    if n_rows <= target:
        return n_rows
    t = (target // 8) * 8
    while t >= 8:
        if n_rows % t == 0:
            return t
        t -= 8
    return n_rows


# ----------------------------- kernel helpers --------------------------------

def _layernorm(x, w, b, eps):
    # PyTorch LayerNorm: biased variance over the last dim (f32 math).
    mu = jnp.mean(x, axis=-1, keepdims=True)
    var = jnp.mean((x - mu) ** 2, axis=-1, keepdims=True)
    return (x - mu) * jax.lax.rsqrt(var + eps) * w + b


def _gelu_exact(x):
    # F.gelu default (exact, erf-based).
    return 0.5 * x * (1.0 + jax.lax.erf(x * (1.0 / math.sqrt(2.0))))


# ------------------------------ Pallas kernels --------------------------------

def embed_ln_kernel(x_ref, ps_ref, w_ref, b_ref, o_ref, *, eps):
    """word-embedding rows + (pos+sent) add + LayerNorm, fused."""
    x = x_ref[0] + ps_ref[...]                       # (tS, D) f32
    o_ref[0] = _layernorm(x, w_ref[0], b_ref[0], eps)


def encoder_layer_kernel(x_ref, wqkv_ref, bqkv_ref, wo_ref, bo_ref,
                         ln1w_ref, ln1b_ref, w1_ref, b1_ref, w2_ref, b2_ref,
                         ln2w_ref, ln2b_ref, o_ref, *, num_heads, dh, eps):
    """One fused post-norm encoder layer for one batch element.

    QKV (full-N matmul) -> per-head softmax attention -> head-concat ctx in
    VMEM -> full-K Wo matmul -> LN1 -> FFN (gelu) -> LN2.  No intermediate
    ever leaves VMEM.
    """
    x = x_ref[0]                                     # (S, D) f32 (residual)
    D = num_heads * dh
    xb = x.astype(jnp.bfloat16)

    # Fused QKV projection: (S, D) @ (D, 3D), f32 accumulation.
    qkv = jnp.dot(xb, wqkv_ref[...],
                  preferred_element_type=jnp.float32) + bqkv_ref[0]

    scale = 1.0 / math.sqrt(dh)
    ctx_heads = []
    for h in range(num_heads):                       # static unroll over heads
        q = qkv[:, h * dh:(h + 1) * dh].astype(jnp.bfloat16)
        k = qkv[:, D + h * dh:D + (h + 1) * dh].astype(jnp.bfloat16)
        v = qkv[:, 2 * D + h * dh:2 * D + (h + 1) * dh].astype(jnp.bfloat16)
        s = jnp.einsum('qe,ke->qk', q, k,
                       preferred_element_type=jnp.float32) * scale
        s = s - jnp.max(s, axis=-1, keepdims=True)
        p = jnp.exp(s)
        p = p * pl.reciprocal(jnp.sum(p, axis=-1, keepdims=True), approx=True)
        ctx_heads.append(jnp.dot(p.astype(jnp.bfloat16), v,
                                 preferred_element_type=jnp.float32))
    # head-concatenated, lane-dense context (S, D) in f32
    ctx = jnp.concatenate(ctx_heads, axis=-1)

    # output projection: single full-K matmul against pre-transposed Wo.
    attn = jnp.dot(ctx.astype(jnp.bfloat16), wo_ref[...],
                   preferred_element_type=jnp.float32) + bo_ref[0]

    # post-norm encoder: x1 = norm1(x + attn)   (dropout = identity)
    x1 = _layernorm(x + attn, ln1w_ref[0], ln1b_ref[0], eps)

    # feed-forward: linear1 -> gelu -> linear2 (pre-transposed bf16 weights)
    h1 = jnp.dot(x1.astype(jnp.bfloat16), w1_ref[...],
                 preferred_element_type=jnp.float32) + b1_ref[0]
    h1 = _gelu_exact(h1)
    ff = jnp.dot(h1.astype(jnp.bfloat16), w2_ref[...],
                 preferred_element_type=jnp.float32) + b2_ref[0]

    # x = norm2(x1 + ff)
    o_ref[0] = _layernorm(x1 + ff, ln2w_ref[0], ln2b_ref[0], eps)


# ------------------------------- wrappers -------------------------------------

def embed_layernorm(x, ps, w, b, eps):
    """x: (B,S,D) word embeddings; ps: (S,D) = pos_emb[:S] + sent_emb[0]."""
    B, S, D = x.shape
    tS = _row_tile(S, _row_tile_target())
    return pl.pallas_call(
        functools.partial(embed_ln_kernel, eps=eps),
        out_shape=jax.ShapeDtypeStruct((B, S, D), jnp.float32),
        grid=(B, S // tS),
        in_specs=[pl.BlockSpec((1, tS, D), lambda b, s: (b, s, 0)),
                  pl.BlockSpec((tS, D), lambda b, s: (s, 0)),
                  pl.BlockSpec((1, D), lambda b, s: (0, 0),
                               pipeline_mode=pl.Buffered(1)),
                  pl.BlockSpec((1, D), lambda b, s: (0, 0),
                               pipeline_mode=pl.Buffered(1))],
        out_specs=pl.BlockSpec((1, tS, D), lambda b, s: (b, s, 0)),
        compiler_params=pltpu.CompilerParams(
            dimension_semantics=("parallel", "parallel"),
            vmem_limit_bytes=_vmem_limit()),
    )(x, ps, w, b)


def encoder_layer(x, p, num_heads, eps):
    B, S, D = x.shape
    dh = D // num_heads
    d_ff = p["w1t"].shape[1]

    def _const(shape):
        nd = len(shape)
        # grid-invariant blocks: single-buffer (double-buffering buys nothing
        # and wastes VMEM, which matters under v7x's 64 MiB ceiling).
        return pl.BlockSpec(shape, lambda b, _n=nd: (0,) * _n,
                            pipeline_mode=pl.Buffered(1))

    return pl.pallas_call(
        functools.partial(encoder_layer_kernel,
                          num_heads=num_heads, dh=dh, eps=eps),
        out_shape=jax.ShapeDtypeStruct((B, S, D), jnp.float32),
        grid=(B,),
        in_specs=[
            pl.BlockSpec((1, S, D), lambda b: (b, 0, 0)),   # x (residual)
            _const((D, 3 * D)),                             # wqkv_t
            _const((1, 3 * D)),                             # bqkv
            _const((D, D)),                                 # wo_t
            _const((1, D)),                                 # bo
            _const((1, D)),                                 # ln1w
            _const((1, D)),                                 # ln1b
            _const((D, d_ff)),                              # w1t
            _const((1, d_ff)),                              # b1
            _const((d_ff, D)),                              # w2t
            _const((1, D)),                                 # b2
            _const((1, D)),                                 # ln2w
            _const((1, D)),                                 # ln2b
        ],
        out_specs=pl.BlockSpec((1, S, D), lambda b: (b, 0, 0)),
        compiler_params=pltpu.CompilerParams(
            dimension_semantics=("parallel",),
            vmem_limit_bytes=_vmem_limit()),
    )(x, p["wqkv_t"], p["bqkv"], p["wo_t"], p["bo"],
      p["ln1w"], p["ln1b"], p["w1t"], p["b1"], p["w2t"], p["b2"],
      p["ln2w"], p["ln2b"])


def bert_forward(token_ids, params, num_heads, eps=1e-12):
    B, S = token_ids.shape
    # TODO(synk): embedding row gather kept in plain JAX glue (data-dependent
    # gather, not a matmul/reduction hot path).
    x = params["word_emb"][token_ids]                            # (B, S, D)
    # tiny (S, D) combine of positional (0..S-1) + sentence-id-0 embeddings;
    # the (B,S,D)-sized adds are fused into the LayerNorm kernel below.
    ps = params["pos_emb"][:S] + params["sent_emb"][0][None, :]  # (S, D)
    x = embed_layernorm(x, ps, params["emb_lnw"], params["emb_lnb"], eps)
    # dropout: identity at inference
    for blk in params["blocks"]:
        x = encoder_layer(x, blk, num_heads, eps)
    return x


# ---------------------------- parameter init ----------------------------------

def xavier_uniform(key, shape):
    fan_out, fan_in = shape[0], shape[1]
    bound = math.sqrt(6.0 / (fan_in + fan_out))
    return jax.random.uniform(key, shape, jnp.float32, -bound, bound)


def prepare_block(pt):
    """One-time wrapper-side layout plumbing: pre-transpose to MXU-ready
    (in-features, out-features) layout and cast matmul weights to bf16."""
    D = pt["out_proj_weight"].shape[0]
    return {
        "wqkv_t": jnp.transpose(pt["in_proj_weight"]).astype(jnp.bfloat16),  # (D, 3D) [q|k|v]
        "bqkv": pt["in_proj_bias"].reshape(1, 3 * D).astype(jnp.float32),
        "wo_t": jnp.transpose(pt["out_proj_weight"]).astype(jnp.bfloat16),   # (D, D)
        "bo": pt["out_proj_bias"].reshape(1, D).astype(jnp.float32),
        "ln1w": pt["ln1w"], "ln1b": pt["ln1b"],
        "w1t": jnp.transpose(pt["w1"]).astype(jnp.bfloat16),                 # (D, d_ff)
        "b1": pt["b1"].reshape(1, -1),
        "w2t": jnp.transpose(pt["w2"]).astype(jnp.bfloat16),                 # (d_ff, D)
        "b2": pt["b2"].reshape(1, -1),
        "ln2w": pt["ln2w"], "ln2b": pt["ln2b"],
    }


def init_params(key, num_blocks, num_heads, d_model, vocab_size, d_ff, max_len):
    keys = jax.random.split(key, 3 + 4 * num_blocks)
    params = {
        "word_emb": xavier_uniform(keys[0], (vocab_size, d_model)),
        "pos_emb": xavier_uniform(keys[1], (max_len, d_model)),
        "sent_emb": xavier_uniform(keys[2], (2, d_model)),
        "emb_lnw": jnp.ones((1, d_model), jnp.float32),
        "emb_lnb": jnp.zeros((1, d_model), jnp.float32),
        "blocks": [],
    }
    for i in range(num_blocks):
        k0, k1, k2, k3 = keys[3 + 4 * i: 3 + 4 * (i + 1)]
        pt = {  # PyTorch-layout params (what nn.TransformerEncoderLayer holds)
            "in_proj_weight": xavier_uniform(k0, (3 * d_model, d_model)),
            "in_proj_bias": jnp.zeros((3 * d_model,), jnp.float32),
            "out_proj_weight": xavier_uniform(k1, (d_model, d_model)),
            "out_proj_bias": jnp.zeros((d_model,), jnp.float32),
            "ln1w": jnp.ones((1, d_model), jnp.float32),
            "ln1b": jnp.zeros((1, d_model), jnp.float32),
            "w1": xavier_uniform(k2, (d_ff, d_model)),
            "b1": jnp.zeros((d_ff,), jnp.float32),
            "w2": xavier_uniform(k3, (d_model, d_ff)),
            "b2": jnp.zeros((d_model,), jnp.float32),
            "ln2w": jnp.ones((1, d_model), jnp.float32),
            "ln2b": jnp.zeros((1, d_model), jnp.float32),
        }
        params["blocks"].append(prepare_block(pt))
    return params


# --------------------------------- main ---------------------------------------

if __name__ == "__main__":
    num_blocks, num_heads = 2, 4
    d_model, d_ff = 32, 64
    vocab_size, max_len = 100, 64
    B, S = 2, 8

    key = jax.random.PRNGKey(0)
    pkey, xkey = jax.random.split(key)
    params = init_params(pkey, num_blocks, num_heads, d_model, vocab_size,
                         d_ff, max_len)
    token_ids = jax.random.randint(xkey, (B, S), 0, vocab_size, dtype=jnp.int32)

    out = bert_forward(token_ids, params, num_heads, eps=1e-12)
    out = jax.block_until_ready(out)
    assert out.shape == (B, S, d_model)
    assert bool(jnp.all(jnp.isfinite(out)))
    print("KERNEL_OK")
</pallas_src>

<mosaic_0001>
module attributes {stable_mosaic.version = 11 : i64} {
  func.func @embed_ln_kernel(%arg0: i32, %arg1: i32, %arg2: memref<1x8x32xf32, #tpu.memory_space<vmem>>, %arg3: memref<8x32xf32, #tpu.memory_space<vmem>>, %arg4: memref<1x32xf32, #tpu.memory_space<vmem>>, %arg5: memref<1x32xf32, #tpu.memory_space<vmem>>, %arg6: memref<1x8x32xf32, #tpu.memory_space<vmem>>) attributes {dimension_semantics = [#tpu.dimension_semantics<parallel>, #tpu.dimension_semantics<parallel>], iteration_bounds = array<i64: 2, 1>, scalar_prefetch = 0 : i64, scratch_operands = 0 : i64, tpu.core_type = #tpu.core_type<tc>, window_params = [{transform_indices = @transform_0, window_bounds = array<i64: 1, 8, 32>}, {transform_indices = @transform_1, window_bounds = array<i64: 8, 32>}, {pipeline_mode = #tpu.pipeline_mode<synchronous>, transform_indices = @transform_2, window_bounds = array<i64: 1, 32>}, {pipeline_mode = #tpu.pipeline_mode<synchronous>, transform_indices = @transform_3, window_bounds = array<i64: 1, 32>}, {transform_indices = @transform_4, window_bounds = array<i64: 1, 8, 32>}]} {
    %c0 = arith.constant 0 : index
    %c0_0 = arith.constant 0 : index
    %c0_1 = arith.constant 0 : index
    %0 = vector.load %arg2[%c0, %c0_0, %c0_1] : memref<1x8x32xf32, #tpu.memory_space<vmem>>, vector<1x8x32xf32>
    %1 = vector.shape_cast %0 : vector<1x8x32xf32> to vector<8x32xf32>
    %c0_2 = arith.constant 0 : index
    %c0_3 = arith.constant 0 : index
    %2 = vector.load %arg3[%c0_2, %c0_3] : memref<8x32xf32, #tpu.memory_space<vmem>>, vector<8x32xf32>
    %3 = arith.addf %1, %2 : vector<8x32xf32>
    %c0_4 = arith.constant 0 : index
    %c0_5 = arith.constant 0 : index
    %4 = vector.load %arg4[%c0_4, %c0_5] : memref<1x32xf32, #tpu.memory_space<vmem>>, vector<1x32xf32>
    %5 = vector.shape_cast %4 : vector<1x32xf32> to vector<32xf32>
    %c0_6 = arith.constant 0 : index
    %c0_7 = arith.constant 0 : index
    %6 = vector.load %arg5[%c0_6, %c0_7] : memref<1x32xf32, #tpu.memory_space<vmem>>, vector<1x32xf32>
    %7 = vector.shape_cast %6 : vector<1x32xf32> to vector<32xf32>
    %cst = arith.constant dense<0.000000e+00> : vector<8xf32>
    %8 = vector.multi_reduction <add>, %3, %cst [1] : vector<8x32xf32> to vector<8xf32>
    %9 = vector.shape_cast %8 : vector<8xf32> to vector<8x1xf32>
    %cst_8 = arith.constant 3.200000e+01 : f32
    %10 = vector.broadcast %cst_8 : f32 to vector<8x1xf32>
    %11 = arith.divf %9, %10 : vector<8x1xf32>
    %12 = vector.broadcast %11 : vector<8x1xf32> to vector<8x32xf32>
    %13 = arith.subf %3, %12 : vector<8x32xf32>
    %14 = arith.mulf %13, %13 : vector<8x32xf32>
    %cst_9 = arith.constant dense<0.000000e+00> : vector<8xf32>
    %15 = vector.multi_reduction <add>, %14, %cst_9 [1] : vector<8x32xf32> to vector<8xf32>
    %16 = vector.shape_cast %15 : vector<8xf32> to vector<8x1xf32>
    %cst_10 = arith.constant 3.200000e+01 : f32
    %17 = vector.broadcast %cst_10 : f32 to vector<8x1xf32>
    %18 = arith.divf %16, %17 : vector<8x1xf32>
    %19 = vector.broadcast %11 : vector<8x1xf32> to vector<8x32xf32>
    %20 = arith.subf %3, %19 : vector<8x32xf32>
    %cst_11 = arith.constant 9.99999996E-13 : f32
    %21 = vector.broadcast %cst_11 : f32 to vector<8x1xf32>
    %22 = arith.addf %18, %21 : vector<8x1xf32>
    %23 = math.rsqrt %22 : vector<8x1xf32>
    %24 = vector.broadcast %23 : vector<8x1xf32> to vector<8x32xf32>
    %25 = arith.mulf %20, %24 : vector<8x32xf32>
    %26 = vector.shape_cast %5 : vector<32xf32> to vector<1x32xf32>
    %27 = vector.broadcast %26 : vector<1x32xf32> to vector<8x32xf32>
    %28 = arith.mulf %25, %27 : vector<8x32xf32>
    %29 = vector.shape_cast %7 : vector<32xf32> to vector<1x32xf32>
    %30 = vector.broadcast %29 : vector<1x32xf32> to vector<8x32xf32>
    %31 = arith.addf %28, %30 : vector<8x32xf32>
    %c0_12 = arith.constant 0 : index
    %c0_13 = arith.constant 0 : index
    %c0_14 = arith.constant 0 : index
    %32 = vector.load %arg6[%c0_12, %c0_13, %c0_14] : memref<1x8x32xf32, #tpu.memory_space<vmem>>, vector<1x8x32xf32>
    %33 = vector.shape_cast %32 : vector<1x8x32xf32> to vector<8x32xf32>
    %34 = vector.shape_cast %31 : vector<8x32xf32> to vector<1x8x32xf32>
    tpu.vector_store %arg6[%c0_12, %c0_13, %c0_14], %34 {strides = array<i32>} : memref<1x8x32xf32, #tpu.memory_space<vmem>>, vector<1x8x32xf32>,
    return
  }
  func.func @transform_0(%arg0: i32, %arg1: i32) -> (i32, i32, i32) {
    %c0_i32 = arith.constant 0 : i32
    %c0_i32_0 = arith.constant 0 : i32
    return %arg0, %arg1, %c0_i32 : i32, i32, i32
  }
  func.func @transform_1(%arg0: i32, %arg1: i32) -> (i32, i32) {
    %c0_i32 = arith.constant 0 : i32
    %c0_i32_0 = arith.constant 0 : i32
    return %arg1, %c0_i32 : i32, i32
  }
  func.func @transform_2(%arg0: i32, %arg1: i32) -> (i32, i32) {
    %c0_i32 = arith.constant 0 : i32
    %c0_i32_0 = arith.constant 0 : i32
    %c0_i32_1 = arith.constant 0 : i32
    return %c0_i32, %c0_i32_0 : i32, i32
  }
  func.func @transform_3(%arg0: i32, %arg1: i32) -> (i32, i32) {
    %c0_i32 = arith.constant 0 : i32
    %c0_i32_0 = arith.constant 0 : i32
    %c0_i32_1 = arith.constant 0 : i32
    return %c0_i32, %c0_i32_0 : i32, i32
  }
  func.func @transform_4(%arg0: i32, %arg1: i32) -> (i32, i32, i32) {
    %c0_i32 = arith.constant 0 : i32
    %c0_i32_0 = arith.constant 0 : i32
    return %arg0, %arg1, %c0_i32 : i32, i32, i32
  }
}

</mosaic_0001>

<bundles_post_ra>
// kernel: tpu_custom_call.1
= control target key start
LH: loop header
LB: loop body
LE: loop exit
PB: predicated region body
PF: predicated region fallthrough
CT: control target
= control target key end

     0   :  { %9 = vsyncpa [#allocation3], 0  ;;  %s883_s0 = inlined_call_operand.hbm [shape: f32[2,8,32], index: 0, kind: input, shape index: {}]   ;;  %s884_s1 = inlined_call_operand.hbm [shape: f32[8,32], index: 1, kind: input, shape index: {}]   ;;  %s885_s2 = inlined_call_operand.vmem [shape: f32[1,32], index: 2, kind: input, shape index: {}]   ;;  %s886_s3 = inlined_call_operand.vmem [shape: f32[1,32], index: 3, kind: input, shape index: {}]   ;;  %s887_s4 = inlined_call_operand.hbm [shape: f32[2,8,32], index: 4, kind: output, shape index: {}]  }
   0x1   :  { %11 = vsyncpa [#allocation3 + $0x1], 0 }
   0x2   :  { %12 = vsyncpa [#allocation6], 0 }
   0x3   :  { %13 = vsyncpa [#allocation4], 0 }
   0x4   :  { %15 = vsyncpa [#allocation4 + $0x1], 0  ;;  %s658_s15 = smov 0   ;;  %s660_s16 = smov 0  }
   0x5   :  { %s662_s17 = smov 0   ;;  %s664_s18 = smov 0  }
   0x6   :  { %s666_s19 = smov 0   ;;  %s668_s20 = smov 0  }
   0x7 LB: > { %s392_s21 = sadd.s32 4294967295, %s628_s20   ;;  %s393_s22 = sadd.s32 4294967294, %s628_s20   ;;  %s628_s20 = sphi %s668_s20, %s21_s20   ;;  %s624_s19 = sphi %s666_s19, %s912_s19   ;;  %s620_s18 = sphi %s664_s18, %s911_s18   ;;  %s616_s17 = sphi %s662_s17, %s910_s17   ;;  %s612_s16 = sphi %s660_s16, %s909_s16   ;;  %s608_s15 = sphi %s658_s15, %s908_s15  }
   0x8   : > { %p55_p0 = scmp.ne.s32.totalorder %s612_s16, %s608_s15  ;;  %p692_p1 = scmp.eq.s32.totalorder %s392_s21, 0 }
   0x9   : > { %p696_p2 = scmp.eq.s32.totalorder %s392_s21, 1  ;;  %p155_p3 = scmp.eq.s32.totalorder %s393_s22, 1 }
   0xa   : > { %s892_s23 = scalar_select %p692_p1, 1, 0 }
   0xb   : > { %s893_s24 = scalar_select %p696_p2, 1, 0 }
   0xc   : > { %p702_p4 = por %p692_p1, %p55_p0  ;;  %p394_p5 = scmp.ge.s32.totalorder %s628_s20, 1 }
   0xd   : > { %p707_p6 = por %p155_p3, %p55_p0  ;;  %p162_p7 = scmp.lt.s32.totalorder %s628_s20, 3 }
   0xe   : > { %s894_s25 = scalar_select %p702_p4, 1, 0 }
   0xf   : > { %s895_s26 = scalar_select %p707_p6, 1, 0 }
  0x10   : > { %p712_p8 = pnand %p394_p5, %p162_p7  ;;  %s630_s28 = smov [#allocation5]  }
  0x11   : > { %s177_s29 = sshll.u32 %s630_s28, 4  ;;  %s33_s5 = sadd.s32 1, %s624_s19  ;;  %s178_s29 = int_to_ptr.vmem [resolvable:$true] %s177_s29 }
  0x12   : > { %s896_s27 = scalar_select %p712_p8, 1, 0 }
  0x13   : > { %p417_p10 = pneg %p712_p8  ;;  %s42_s6 = sadd.s32 1, %s616_s17 }
  0x14   : > { %p727_p12 = scmp.ge.s32.totalorder %s33_s5, 2  ;;  %s484_s10 = scalar_lea.hbm %s884_s1, 128 }
  0x15   : > { %p721_p11 = pnand %p417_p10, %p692_p1  ;;  %p485_p13 = scmp.ne.s32.totalorder %s884_s1, %s484_s10 }
  0x16   : > { %s898_s7 = scalar_select %p727_p12, 1, 0 }
  0x17   : > { %p486_p0 = pneg %p721_p11  ;;  %p491_p7 = scmp.lt.u32.totalorder %s484_s10, %s884_s1 }
  0x19   : > { %p487_p3 = pnand %p486_p0, %p485_p13 }
  0x1b   : > { %p488_p5 = pneg %p487_p3 }
  0x1d   : > { %p493_p10 = pnand %p491_p7, %p488_p5 }
  0x1f   : > { %496 = shalt.err (!%p493_p10)
}
  0x20   : > { %s497_s21 = scalar_lea.vmem %s178_s29, 128  ;;  %p505_p4 = scmp.lt.s32.totalorder %s178_s29, %s178_s29 }
  0x21   : > { %p498_p9 = scmp.ne.s32.totalorder %s178_s29, %s497_s21  ;;  %p506_p8 = scmp.lt.s32.totalorder %s497_s21, %s497_s21 }
  0x23   : > { %p500_p6 = pnand %p498_p9, %p486_p0  ;;  %p507_p2 = por %p506_p8, %p505_p4 }
  0x25   : > { %p501_p1 = pneg %p500_p6 }
  0x27   : > { %p508_p12 = pnand %p507_p2, %p501_p1 }
  0x29   : > { %511 = shalt.err (!%p508_p12)
}
  0x2a   : > { %420 = dma.hbm_to_vmem [thread:$0]  (!%p721_p11), %s884_s1, 128, %s178_s29, [#allocation6]  }
  0x2b   : > { %p899_p4 = scmp.ne.s32.totalorder %s898_s7, 0  ;;  %p49_p1 = scmp.ne.s32.totalorder %s616_s17, %s612_s16 }
  0x2c   : > { %p50_p2 = scmp.eq.s32.totalorder %s628_s20, 0  ;;  %p430_p6 = scmp.lt.s32.totalorder %s628_s20, 2 }
  0x2d   : > { %s914_s5 = smov (%p899_p4, %s33_s5), 0  ;;  %p900_p12 = scmp.ne.s32.totalorder %s893_s24, 0 }
  0x2e   : > { %s37_s30 = ssub.s32 %s624_s19, %s914_s5  ;;  %p51_p9 = por %p50_p2, %p49_p1 }
  0x2f   : > { %p40_p8 = scmp.eq.s32.totalorder %s37_s30, 0  ;;  %p759_p13 = por %p900_p12, %p49_p1 }
  0x30   : > { %s194_s9 = sand.u32 1, %s616_s17   ;;  %s398_s7 = sshll.u32 %s624_s19, 7 }
  0x31   : > { %s767_s10 = scalar_select %p40_p8, %s616_s17, %s42_s6  }
  0x32   : > { %s397_s29 = sshll.u32 %s194_s9, 3  ;;  %s773_s13 = scalar_lea.hbm %s883_s0, %s398_s7 }
  0x33   : > { %s198_s24 = scalar_lea.vmem [#allocation2], %s397_s29  ;;  %p777_p11 = pnand %p430_p6, %p51_p9 }
  0x34   : > { %s206_s14 = sshll.u32 %s198_s24, 4  ;;  %s195_s6 = scalar_lea.sflag [#allocation3], %s194_s9  ;;  %s775_s14 = int_to_ptr.vmem [resolvable:$true] %s206_s14 }
  0x35   : > { %s512_s22 = scalar_lea.hbm %s773_s13, 128  ;;  %p514_p3 = pneg %p777_p11 }
  0x36   : > { %p513_p0 = scmp.ne.s32.totalorder %s773_s13, %s512_s22  ;;  %s517_s29 = scalar_lea.hbm %s883_s0, 256 }
  0x37   : > { %p518_p10 = scmp.lt.u32.totalorder %s773_s13, %s883_s0  ;;  %p519_p4 = scmp.lt.u32.totalorder %s517_s29, %s512_s22 }
  0x38   : > { %p515_p5 = pnand %p514_p3, %p513_p0  ;;  %p521_p2 = scmp.lt.u32.totalorder %s512_s22, %s773_s13 }
  0x39   : > { %p520_p1 = por %p519_p4, %p518_p10 }
  0x3a   : > { %p516_p7 = pneg %p515_p5 }
  0x3b   : > { %p522_p6 = por %p521_p2, %p520_p1 }
  0x3d   : > { %p523_p8 = pnand %p522_p6, %p516_p7 }
  0x3f   : > { %526 = shalt.err (!%p523_p8)
}
  0x40   : > { %s527_s9 = scalar_lea.vmem %s775_s14, 128  ;;  %s631_s12 = smov [#allocation2]  }
  0x41   : > { %p528_p9 = scmp.ne.s32.totalorder %s775_s14, %s527_s9  ;;  %s532_s24 = sshll.u32 %s631_s12, 4  ;;  %s533_s24 = int_to_ptr.vmem [resolvable:$false] %s532_s24 }
  0x42   : > { %s534_s28 = scalar_lea.vmem %s533_s24, 256  ;;  %p535_p5 = scmp.lt.s32.totalorder %s775_s14, %s533_s24 }
  0x43   : > { %p530_p12 = pnand %p528_p9, %p514_p3  ;;  %p536_p10 = scmp.lt.s32.totalorder %s534_s28, %s527_s9 }
  0x45   : > { %p531_p0 = pneg %p530_p12  ;;  %p537_p4 = por %p536_p10, %p535_p5 }
  0x47   : > { %p538_p1 = pnand %p537_p4, %p531_p0 }
  0x49   : > { %541 = shalt.err (!%p538_p1)
}
  0x4a   : > { %424 = dma.hbm_to_vmem [thread:$0]  (!%p777_p11), %s773_s13, 128, %s775_s14, %s195_s6  }
  0x4b   : > { %p903_p7 = scmp.ne.s32.totalorder %s896_s27, 0 }
  0x4c   : > { %s809_s22 = sand.u32 (!%p903_p7), 1, %s612_s16   ;;  %p904_p3 = scmp.ne.s32.totalorder (!%p903_p7), %s894_s25, 0 }
  0x4d   : > { %215 = sbr.rel (%p903_p7) target bundleno = 418 (0x1a2), region = 36  ;;  %s400_s30 = sshll.u32 (!%p903_p7), %s809_s22, 3 }
  0x4e   : > { %s218_s29 = scalar_lea.sflag (!%p903_p7), [#allocation3], %s809_s22  ;;  %s221_s7 = scalar_lea.vmem (!%p903_p7), [#allocation2], %s400_s30 }
  0x54   : > { %595 = dma.done.wait (%p904_p3), %s218_s29, 128  }
  0x55   : > { %597 = vsyncadd (%p904_p3), %s218_s29, 4294967168  ;;  %p905_p2 = scmp.ne.s32.totalorder %s892_s23, 0 }
  0x57   : > { %599 = dma.done.wait (%p905_p2), [#allocation6], 128  }
  0x58   : > { %601 = vsyncadd (%p905_p2), [#allocation6], 4294967168  ;;  %v250_v0 = vld [vmem:[%s221_s7] sm:$0xff]  ;;  %v251_v1 = vld [vmem:[#allocation5] sm:$0xff]  ;;  %vm255_vm0 = vcmask 261120   ;;  %s406_s14 = sshll.u32 %s620_s18, 7 }
  0x59   : > { %v252_v2 = vadd.f32 %v251_v1, %v250_v0  ;;  %v403_v13 = vld [vmem:[%s885_s2] ss:$0 sm:$0xff]  ;;  %s249_s21 = scalar_lea.vmem [#allocation7], %s400_s30  ;;  %s833_s12 = scalar_lea.hbm %s887_s4, %s406_s14 }
  0x5a   : > { %v404_v15 = vld [vmem:[%s886_s3] ss:$0 sm:$0xff]  ;;  %s300_s6 = sshll.u32 %s249_s21, 4  ;;  %s286_s24 = scalar_lea.sflag [#allocation4], %s809_s22  ;;  %s835_s6 = int_to_ptr.vmem [resolvable:$true] %s300_s6 }
  0x5b   : > { %v256_v3 = vsel %vm255_vm0, %v252_v2, 0.0  ;;  %s542_s28 = scalar_lea.vmem %s835_s6, 128  ;;  %s632_s18 = smov [#allocation7]  }
  0x5c   : > { %257 = vadd.xlane.f32.xlu0 %v256_v3  ;;  %p543_p11 = scmp.ne.s32.totalorder %s835_s6, %s542_s28  ;;  %s546_s30 = sshll.u32 %s632_s18, 4  ;;  %s547_s30 = int_to_ptr.vmem [resolvable:$false] %s546_s30 }
  0x5d   : > { %s548_s29 = scalar_lea.vmem %s547_s30, 256  ;;  %p549_p9 = scmp.lt.s32.totalorder %s835_s6, %s547_s30 }
  0x5e   : > { %p544_p6 = pnand %p543_p11, %p759_p13  ;;  %p550_p12 = scmp.lt.s32.totalorder %s548_s29, %s542_s28 }
  0x60   : > { %p545_p8 = pneg %p544_p6  ;;  %p551_p0 = por %p550_p12, %p549_p9 }
  0x62   : > { %p552_p5 = pnand %p551_p0, %p545_p8 }
  0xe9   : > { %v258_v4 = vpop.xlane.xlu0 %257 }
  0xea   : > { %v260_v5 = vmul.f32 0.03125, %v258_v4 }
  0xec   : > { %v261_v6 = vsub.f32 %v252_v2, %v260_v5 }
  0xee   : > { %v262_v7 = vmul.f32 %v261_v6, %v261_v6 }
  0xf0   : > { %v263_v8 = vsel %vm255_vm0, %v262_v7, 0.0 }
  0xf1   : > { %264 = vadd.xlane.f32.xlu0 %v263_v8 }
 0x17e   : > { %v265_v9 = vpop.xlane.xlu0 %264 }
 0x17f   : > { %v266_v10 = vmul.f32 0.03125, %v265_v9 }
 0x181   : > { %v267_v11 = vadd.f32 1e-12, %v266_v10 }
 0x183   : > { %482 = vrsqrt.f32 %v267_v11 }
 0x18d   : > { %v483_v12 = vpop.eup %482 }
 0x18e   : > { %v269_v14 = vmul.f32 %v483_v12, %v261_v6 }
 0x190   : > { %v276_v16 = vmul.f32 %v403_v13, %v269_v14 }
 0x192   : > { %v283_v17 = vadd.f32 %v404_v15, %v276_v16 }
 0x194   : > { %284 = vst.msk [vmem:[%s249_s21] sm:$0xff] %vm255_vm0, %v283_v17 }
 0x195   : > { %555 = shalt.err (!%p552_p5)
}
 0x196   : > { %s556_s22 = scalar_lea.hbm %s833_s12, 128  ;;  %s560_s25 = scalar_lea.hbm %s887_s4, 256 }
 0x197   : > { %p557_p10 = scmp.ne.s32.totalorder %s833_s12, %s556_s22  ;;  %p561_p7 = scmp.lt.u32.totalorder %s833_s12, %s887_s4 }
 0x198   : > { %p562_p3 = scmp.lt.u32.totalorder %s560_s25, %s556_s22  ;;  %p564_p11 = scmp.lt.u32.totalorder %s556_s22, %s833_s12 }
 0x199   : > { %p558_p4 = pnand %p557_p10, %p759_p13 }
 0x19a   : > { %p563_p2 = por %p562_p3, %p561_p7 }
 0x19b   : > { %p559_p1 = pneg %p558_p4 }
 0x19c   : > { %p565_p6 = por %p564_p11, %p563_p2 }
 0x19e   : > { %p566_p8 = pnand %p565_p6, %p559_p1 }
 0x1a0   : > { %569 = shalt.err (!%p566_p8)
}
 0x1a1   : > { %415 = dma.vmem_to_hbm [thread:$0]  (%p759_p13), %s835_s6, 128, %s833_s12, %s286_s24  }
 0x1a2 PF: > { %s312_s14 = sand.u32 1, %s608_s15   ;;  %p906_p9 = scmp.ne.s32.totalorder %s895_s26, 0 }
 0x1a3   : > { %p907_p12 = scmp.ge.s32.totalorder %s628_s20, 2  ;;  %s313_s21 = scalar_lea.sflag [#allocation4], %s312_s14 }
 0x1a5   : > { %p426_p0 = pnand %p907_p12, %p906_p9 }
 0x1a7   : > { %603 = dma.done.wait (!%p426_p0), %s313_s21, 128  }
 0x1a8   : > { %605 = vsyncadd (!%p426_p0), %s313_s21, 4294967168  ;;  %s21_s20 = sadd.s32 1, %s628_s20   ;;  %s908_s15 = smov %s612_s16 }
 0x1a9   : > { %p18_p5 = scmp.ge.s32.totalorder %s21_s20, 4   ;;  %s909_s16 = smov %s616_s17 }
 0x1aa   : > { %s910_s17 = smov %s767_s10  ;;  %s911_s18 = smov %s624_s19 }
 0x1ab   : > { %s912_s19 = smov %s914_s5  ;;  %20 = sbr.rel (!%p18_p5) target bundleno = 7 (0x7), region = 86 }
 0x1b2   :  { %318 = vsyncpa [#allocation3], 1 }
 0x1b3   :  { %320 = vsyncpa [#allocation3 + $0x1], 1 }
 0x1b4   :  { %321 = vsyncpa [#allocation6], 1 }
 0x1b5   :  { %322 = vsyncpa [#allocation4], 1 }
 0x1b6   :  { %324 = vsyncpa [#allocation4 + $0x1], 1 }

</bundles_post_ra>
